<compile_context>
chip_gen: v7x
topology: tpu7x:2x2x1
jax: 0.10.0
libtpu: 0.0.40
codegen_flags: <defaults>
</compile_context>

<pallas_src>
import functools

import jax
import jax.numpy as jnp
from jax.experimental import pallas as pl
from jax.experimental.pallas import tpu as pltpu

H1, H2, H3 = 64, 128, 256
H1_PAD = 128      # lane-dense padding of the 64-wide hidden layer
OUT_PAD = 128     # lane-dense padding of the 1-wide output head (MXU side only)


def _round_up(x, m):
    return ((int(x) + m - 1) // m) * m


def _discriminator_kernel(z_ref,
                          w1_ref, b1_ref,
                          w2_ref, b2_ref,
                          w3_ref, b3_ref,
                          w4_ref, b4_ref,
                          out_ref, *, nsub):
    """One batch tile. Processes `nsub` independent row sub-blocks so the
    MXU work of one sub-block overlaps the VPU (ReLU + bf16 cast) work of the
    other. All matmuls are bf16-in / f32-accumulate on the MXU."""
    tm = z_ref.shape[0]
    rows = tm // nsub
    for s in range(nsub):                       # static unroll (2 short chains)
        r = pl.ds(s * rows, rows)               # static, 16-aligned offsets
        # Layer 1: Linear + ReLU
        h = jnp.dot(z_ref[r, :], w1_ref[...],
                    preferred_element_type=jnp.float32)
        h = jnp.maximum(h + b1_ref[...], 0.0)
        # Layer 2: Linear + ReLU
        h = jnp.dot(h.astype(jnp.bfloat16), w2_ref[...],
                    preferred_element_type=jnp.float32)
        h = jnp.maximum(h + b2_ref[...], 0.0)
        # Layer 3: Linear + ReLU
        h = jnp.dot(h.astype(jnp.bfloat16), w3_ref[...],
                    preferred_element_type=jnp.float32)
        h = jnp.maximum(h + b3_ref[...], 0.0)
        # Layer 4: Linear (lane-padded head for the MXU) + Sigmoid.
        logit = jnp.dot(h.astype(jnp.bfloat16), w4_ref[...],
                        preferred_element_type=jnp.float32) + b4_ref[...]
        # Compact store: only the real column 0 goes back to HBM.
        out_ref[r, :] = jax.nn.sigmoid(logit[:, 0:1]).astype(out_ref.dtype)


def prepare_params(params):
    """One-time conversion of PyTorch-layout params into kernel layout.

    Weights -> (in_features, out_features) bf16, zero-padded to lane-dense
    widths; biases -> (1, out_padded) f32.
    """
    w1 = jnp.asarray(params["w1"], jnp.float32).T                       # (D, 64)
    w1 = jnp.pad(w1, ((0, 0), (0, H1_PAD - H1)))                        # (D, 128)
    b1 = jnp.pad(jnp.asarray(params["b1"], jnp.float32),
                 (0, H1_PAD - H1)).reshape(1, -1)                       # (1, 128)

    w2 = jnp.asarray(params["w2"], jnp.float32).T                       # (64, 128)
    w2 = jnp.pad(w2, ((0, H1_PAD - H1), (0, 0)))                        # (128, 128)
    b2 = jnp.asarray(params["b2"], jnp.float32).reshape(1, -1)          # (1, 128)

    w3 = jnp.asarray(params["w3"], jnp.float32).T                       # (128, 256)
    b3 = jnp.asarray(params["b3"], jnp.float32).reshape(1, -1)          # (1, 256)

    w4 = jnp.asarray(params["w4"], jnp.float32).T                       # (256, 1)
    w4 = jnp.pad(w4, ((0, 0), (0, OUT_PAD - 1)))                        # (256, 128)
    b4 = jnp.pad(jnp.asarray(params["b4"], jnp.float32),
                 (0, OUT_PAD - 1)).reshape(1, -1)                       # (1, 128)

    return (w1.astype(jnp.bfloat16), b1,
            w2.astype(jnp.bfloat16), b2,
            w3.astype(jnp.bfloat16), b3,
            w4.astype(jnp.bfloat16), b4)


def discriminator_forward(z, prep, *, tm=2048):
    """z: (batch, input_size) f32. prep: output of prepare_params.
    Returns (batch, 1) f32 probabilities."""
    batch, d = z.shape

    # --- batch tile selection ---------------------------------------------
    batch16 = _round_up(batch, 16)                  # bf16 sublane packing unit
    # v7x megacore: prefer >= 2 grid steps when the batch permits, so
    # dimension_semantics=("parallel",) can split work across both TCs.
    if batch16 > 256:
        two_step_cap = _round_up(pl.cdiv(batch16, 2), 256)
    else:
        two_step_cap = batch16
    tm_eff = _round_up(max(16, min(int(tm), batch16, two_step_cap)), 16)
    padded = _round_up(batch, tm_eff)
    grid = (padded // tm_eff,)

    # Two independent row sub-blocks when the split keeps bf16 rows 16-aligned.
    nsub = 2 if (tm_eff % 32 == 0 and tm_eff >= 64) else 1

    z_p = z.astype(jnp.bfloat16)
    if padded != batch:
        z_p = jnp.pad(z_p, ((0, padded - batch), (0, 0)))

    w1, b1, w2, b2, w3, b3, w4, b4 = prep

    def const_spec(shape):
        # Constant index map -> operand stays resident in VMEM across steps.
        return pl.BlockSpec(shape, lambda i: (0, 0))

    in_specs = [
        pl.BlockSpec((tm_eff, d), lambda i: (i, 0)),          # z tile
        const_spec((d, H1_PAD)), const_spec((1, H1_PAD)),     # layer 1
        const_spec((H1_PAD, H2)), const_spec((1, H2)),        # layer 2
        const_spec((H2, H3)), const_spec((1, H3)),            # layer 3
        const_spec((H3, OUT_PAD)), const_spec((1, OUT_PAD)),  # layer 4
    ]
    # Compact output: (tm_eff, 1) block == full last dim -> legal, and the HBM
    # writeback is only 4 B/row instead of 512 B/row.
    out_spec = pl.BlockSpec((tm_eff, 1), lambda i: (i, 0))

    weight_bytes = sum(int(v.size) * v.dtype.itemsize
                       for v in (w1, b1, w2, b2, w3, b3, w4, b4))
    cost = pl.CostEstimate(
        flops=2 * padded * (d * H1_PAD + H1_PAD * H2 + H2 * H3 + H3 * OUT_PAD),
        transcendentals=padded,
        # z read once + compact f32 output + weights read once (resident).
        bytes_accessed=int(z_p.size) * 2 + padded * 4 + weight_bytes,
    )

    out = pl.pallas_call(
        functools.partial(_discriminator_kernel, nsub=nsub),
        out_shape=jax.ShapeDtypeStruct((padded, 1), jnp.float32),
        grid=grid,
        in_specs=in_specs,
        out_specs=out_spec,
        compiler_params=pltpu.CompilerParams(
            dimension_semantics=("parallel",),
            # ~8 MiB actually used at tm=2048; 32 MiB fits every generation
            # including v7x's 64 MiB VMEM per TensorCore.
            vmem_limit_bytes=32 * 1024 * 1024,
        ),
        cost_estimate=cost,
    )(z_p, w1, b1, w2, b2, w3, b3, w4, b4)

    return out[:batch]


def init_params(key, input_size):
    """Deterministic init mimicking PyTorch nn.Linear default:
    U(-1/sqrt(fan_in), +1/sqrt(fan_in))."""
    sizes = [(H1, input_size), (H2, H1), (H3, H2), (1, H3)]
    params = {}
    for i, (fan_out, fan_in) in enumerate(sizes, start=1):
        key, kw, kb = jax.random.split(key, 3)
        bound = 1.0 / (fan_in ** 0.5)
        params[f"w{i}"] = jax.random.uniform(kw, (fan_out, fan_in), jnp.float32,
                                             minval=-bound, maxval=bound)
        params[f"b{i}"] = jax.random.uniform(kb, (fan_out,), jnp.float32,
                                             minval=-bound, maxval=bound)
    return params


def _reference_forward(z, params, cast=None):
    """Pure-JAX reference. With cast=jnp.bfloat16 it mirrors the kernel's
    bf16-MXU math."""
    c = (lambda x: x.astype(cast)) if cast is not None else (lambda x: x)
    h = z
    for i in (1, 2, 3):
        pre = jnp.dot(c(h), c(params[f"w{i}"].T),
                      preferred_element_type=jnp.float32) + params[f"b{i}"]
        h = jnp.maximum(pre, 0.0)
    logit = jnp.dot(c(h), c(params["w4"].T),
                    preferred_element_type=jnp.float32) + params["b4"]
    return jax.nn.sigmoid(logit)


if __name__ == "__main__":
    key = jax.random.PRNGKey(0)
    key, kz = jax.random.split(key)

    batch, input_size = 8, 32
    z = jax.random.normal(kz, (batch, input_size), jnp.float32)
    params = init_params(key, input_size)
    prep = prepare_params(params)

    out = jax.block_until_ready(discriminator_forward(z, prep))
    assert out.shape == (batch, 1), out.shape

    ref_matched = _reference_forward(z, params, cast=jnp.bfloat16)
    ref_f32 = _reference_forward(z, params)
    assert jnp.allclose(out, ref_matched, atol=5e-3, rtol=5e-3), \
        "mismatch vs matched bf16 reference"
    assert jnp.allclose(out, ref_f32, atol=3e-2, rtol=3e-2), \
        "mismatch vs f32 reference"

    # Multi-step grid + batch padding (batch not a multiple of the tile).
    key, kz2 = jax.random.split(key)
    batch2 = 200
    z2 = jax.random.normal(kz2, (batch2, input_size), jnp.float32)
    out2 = jax.block_until_ready(discriminator_forward(z2, prep, tm=64))
    ref2 = _reference_forward(z2, params, cast=jnp.bfloat16)
    assert out2.shape == (batch2, 1), out2.shape
    assert jnp.allclose(out2, ref2, atol=5e-3, rtol=5e-3), "mismatch on tiled path"

    # Default-tm path exercising the >=2-grid-step cap (v7x megacore) + padding.
    key, kz3 = jax.random.split(key)
    batch3 = 600
    z3 = jax.random.normal(kz3, (batch3, input_size), jnp.float32)
    out3 = jax.block_until_ready(discriminator_forward(z3, prep))
    ref3 = _reference_forward(z3, params, cast=jnp.bfloat16)
    assert out3.shape == (batch3, 1), out3.shape
    assert jnp.allclose(out3, ref3, atol=5e-3, rtol=5e-3), "mismatch on 2-step path"

    print("KERNEL_OK")
</pallas_src>

<mosaic_0001>
module attributes {stable_mosaic.version = 11 : i64} {
  func.func @_discriminator_kernel(%arg0: i32, %arg1: memref<16x32xbf16, #tpu.memory_space<vmem>>, %arg2: memref<32x128xbf16, #tpu.memory_space<vmem>>, %arg3: memref<1x128xf32, #tpu.memory_space<vmem>>, %arg4: memref<128x128xbf16, #tpu.memory_space<vmem>>, %arg5: memref<1x128xf32, #tpu.memory_space<vmem>>, %arg6: memref<128x256xbf16, #tpu.memory_space<vmem>>, %arg7: memref<1x256xf32, #tpu.memory_space<vmem>>, %arg8: memref<256x128xbf16, #tpu.memory_space<vmem>>, %arg9: memref<1x128xf32, #tpu.memory_space<vmem>>, %arg10: memref<16x1xf32, #tpu.memory_space<vmem>>) attributes {dimension_semantics = [#tpu.dimension_semantics<parallel>], iteration_bounds = array<i64: 1>, scalar_prefetch = 0 : i64, scratch_operands = 0 : i64, tpu.core_type = #tpu.core_type<tc>, window_params = [{transform_indices = @transform_0, window_bounds = array<i64: 16, 32>}, {pipeline_mode = #tpu.pipeline_mode<synchronous>, transform_indices = @transform_1, window_bounds = array<i64: 32, 128>}, {pipeline_mode = #tpu.pipeline_mode<synchronous>, transform_indices = @transform_2, window_bounds = array<i64: 1, 128>}, {pipeline_mode = #tpu.pipeline_mode<synchronous>, transform_indices = @transform_3, window_bounds = array<i64: 128, 128>}, {pipeline_mode = #tpu.pipeline_mode<synchronous>, transform_indices = @transform_4, window_bounds = array<i64: 1, 128>}, {pipeline_mode = #tpu.pipeline_mode<synchronous>, transform_indices = @transform_5, window_bounds = array<i64: 128, 256>}, {pipeline_mode = #tpu.pipeline_mode<synchronous>, transform_indices = @transform_6, window_bounds = array<i64: 1, 256>}, {pipeline_mode = #tpu.pipeline_mode<synchronous>, transform_indices = @transform_7, window_bounds = array<i64: 256, 128>}, {pipeline_mode = #tpu.pipeline_mode<synchronous>, transform_indices = @transform_8, window_bounds = array<i64: 1, 128>}, {transform_indices = @transform_9, window_bounds = array<i64: 16, 1>}]} {
    %c0 = arith.constant 0 : index
    %c0_0 = arith.constant 0 : index
    %0 = vector.load %arg1[%c0, %c0_0] : memref<16x32xbf16, #tpu.memory_space<vmem>>, vector<16x32xbf16>
    %c0_1 = arith.constant 0 : index
    %c0_2 = arith.constant 0 : index
    %1 = vector.load %arg2[%c0_1, %c0_2] : memref<32x128xbf16, #tpu.memory_space<vmem>>, vector<32x128xbf16>
    %cst = arith.constant dense<0.000000e+00> : vector<16x128xf32>
    %2 = tpu.matmul %0, %1, %cst {dimension_numbers = #tpu.dot_dimension_numbers<[1], [0], [0], [1], [0, 0, 1, 1], [], []>} : vector<16x32xbf16>, vector<32x128xbf16>, vector<16x128xf32> -> vector<16x128xf32>
    %c0_3 = arith.constant 0 : index
    %c0_4 = arith.constant 0 : index
    %3 = vector.load %arg3[%c0_3, %c0_4] : memref<1x128xf32, #tpu.memory_space<vmem>>, vector<1x128xf32>
    %4 = vector.broadcast %3 : vector<1x128xf32> to vector<16x128xf32>
    %5 = arith.addf %2, %4 : vector<16x128xf32>
    %cst_5 = arith.constant 0.000000e+00 : f32
    %6 = vector.broadcast %cst_5 : f32 to vector<16x128xf32>
    %7 = arith.maximumf %5, %6 : vector<16x128xf32>
    %8 = arith.truncf %7 : vector<16x128xf32> to vector<16x128xbf16>
    %c0_6 = arith.constant 0 : index
    %c0_7 = arith.constant 0 : index
    %9 = vector.load %arg4[%c0_6, %c0_7] : memref<128x128xbf16, #tpu.memory_space<vmem>>, vector<128x128xbf16>
    %cst_8 = arith.constant dense<0.000000e+00> : vector<16x128xf32>
    %10 = tpu.matmul %8, %9, %cst_8 {dimension_numbers = #tpu.dot_dimension_numbers<[1], [0], [0], [1], [0, 0, 1, 1], [], []>} : vector<16x128xbf16>, vector<128x128xbf16>, vector<16x128xf32> -> vector<16x128xf32>
    %c0_9 = arith.constant 0 : index
    %c0_10 = arith.constant 0 : index
    %11 = vector.load %arg5[%c0_9, %c0_10] : memref<1x128xf32, #tpu.memory_space<vmem>>, vector<1x128xf32>
    %12 = vector.broadcast %11 : vector<1x128xf32> to vector<16x128xf32>
    %13 = arith.addf %10, %12 : vector<16x128xf32>
    %cst_11 = arith.constant 0.000000e+00 : f32
    %14 = vector.broadcast %cst_11 : f32 to vector<16x128xf32>
    %15 = arith.maximumf %13, %14 : vector<16x128xf32>
    %16 = arith.truncf %15 : vector<16x128xf32> to vector<16x128xbf16>
    %c0_12 = arith.constant 0 : index
    %c0_13 = arith.constant 0 : index
    %17 = vector.load %arg6[%c0_12, %c0_13] : memref<128x256xbf16, #tpu.memory_space<vmem>>, vector<128x256xbf16>
    %cst_14 = arith.constant dense<0.000000e+00> : vector<16x256xf32>
    %18 = tpu.matmul %16, %17, %cst_14 {dimension_numbers = #tpu.dot_dimension_numbers<[1], [0], [0], [1], [0, 0, 1, 1], [], []>} : vector<16x128xbf16>, vector<128x256xbf16>, vector<16x256xf32> -> vector<16x256xf32>
    %c0_15 = arith.constant 0 : index
    %c0_16 = arith.constant 0 : index
    %19 = vector.load %arg7[%c0_15, %c0_16] : memref<1x256xf32, #tpu.memory_space<vmem>>, vector<1x256xf32>
    %20 = vector.broadcast %19 : vector<1x256xf32> to vector<16x256xf32>
    %21 = arith.addf %18, %20 : vector<16x256xf32>
    %cst_17 = arith.constant 0.000000e+00 : f32
    %22 = vector.broadcast %cst_17 : f32 to vector<16x256xf32>
    %23 = arith.maximumf %21, %22 : vector<16x256xf32>
    %24 = arith.truncf %23 : vector<16x256xf32> to vector<16x256xbf16>
    %c0_18 = arith.constant 0 : index
    %c0_19 = arith.constant 0 : index
    %25 = vector.load %arg8[%c0_18, %c0_19] : memref<256x128xbf16, #tpu.memory_space<vmem>>, vector<256x128xbf16>
    %cst_20 = arith.constant dense<0.000000e+00> : vector<16x128xf32>
    %26 = tpu.matmul %24, %25, %cst_20 {dimension_numbers = #tpu.dot_dimension_numbers<[1], [0], [0], [1], [0, 0, 1, 1], [], []>} : vector<16x256xbf16>, vector<256x128xbf16>, vector<16x128xf32> -> vector<16x128xf32>
    %c0_21 = arith.constant 0 : index
    %c0_22 = arith.constant 0 : index
    %27 = vector.load %arg9[%c0_21, %c0_22] : memref<1x128xf32, #tpu.memory_space<vmem>>, vector<1x128xf32>
    %28 = vector.broadcast %27 : vector<1x128xf32> to vector<16x128xf32>
    %29 = arith.addf %26, %28 : vector<16x128xf32>
    %30 = vector.extract_strided_slice %29 {offsets = [0, 0], sizes = [16, 1], strides = [1, 1]} : vector<16x128xf32> to vector<16x1xf32>
    %31 = arith.negf %30 : vector<16x1xf32>
    %32 = math.exp %31 : vector<16x1xf32>
    %cst_23 = arith.constant 1.000000e+00 : f32
    %33 = vector.broadcast %cst_23 : f32 to vector<16x1xf32>
    %34 = arith.addf %33, %32 : vector<16x1xf32>
    %35 = arith.divf %33, %34 : vector<16x1xf32>
    %c0_24 = arith.constant 0 : index
    %c0_25 = arith.constant 0 : index
    %36 = vector.load %arg10[%c0_24, %c0_25] : memref<16x1xf32, #tpu.memory_space<vmem>>, vector<16x1xf32>
    tpu.vector_store %arg10[%c0_24, %c0_25], %35 {strides = array<i32>} : memref<16x1xf32, #tpu.memory_space<vmem>>, vector<16x1xf32>,
    return
  }
  func.func @transform_0(%arg0: i32) -> (i32, i32) {
    %c0_i32 = arith.constant 0 : i32
    %c0_i32_0 = arith.constant 0 : i32
    return %arg0, %c0_i32 : i32, i32
  }
  func.func @transform_1(%arg0: i32) -> (i32, i32) {
    %c0_i32 = arith.constant 0 : i32
    %c0_i32_0 = arith.constant 0 : i32
    %c0_i32_1 = arith.constant 0 : i32
    return %c0_i32, %c0_i32_0 : i32, i32
  }
  func.func @transform_2(%arg0: i32) -> (i32, i32) {
    %c0_i32 = arith.constant 0 : i32
    %c0_i32_0 = arith.constant 0 : i32
    %c0_i32_1 = arith.constant 0 : i32
    return %c0_i32, %c0_i32_0 : i32, i32
  }
  func.func @transform_3(%arg0: i32) -> (i32, i32) {
    %c0_i32 = arith.constant 0 : i32
    %c0_i32_0 = arith.constant 0 : i32
    %c0_i32_1 = arith.constant 0 : i32
    return %c0_i32, %c0_i32_0 : i32, i32
  }
  func.func @transform_4(%arg0: i32) -> (i32, i32) {
    %c0_i32 = arith.constant 0 : i32
    %c0_i32_0 = arith.constant 0 : i32
    %c0_i32_1 = arith.constant 0 : i32
    return %c0_i32, %c0_i32_0 : i32, i32
  }
  func.func @transform_5(%arg0: i32) -> (i32, i32) {
    %c0_i32 = arith.constant 0 : i32
    %c0_i32_0 = arith.constant 0 : i32
    %c0_i32_1 = arith.constant 0 : i32
    return %c0_i32, %c0_i32_0 : i32, i32
  }
  func.func @transform_6(%arg0: i32) -> (i32, i32) {
    %c0_i32 = arith.constant 0 : i32
    %c0_i32_0 = arith.constant 0 : i32
    %c0_i32_1 = arith.constant 0 : i32
    return %c0_i32, %c0_i32_0 : i32, i32
  }
  func.func @transform_7(%arg0: i32) -> (i32, i32) {
    %c0_i32 = arith.constant 0 : i32
    %c0_i32_0 = arith.constant 0 : i32
    %c0_i32_1 = arith.constant 0 : i32
    return %c0_i32, %c0_i32_0 : i32, i32
  }
  func.func @transform_8(%arg0: i32) -> (i32, i32) {
    %c0_i32 = arith.constant 0 : i32
    %c0_i32_0 = arith.constant 0 : i32
    %c0_i32_1 = arith.constant 0 : i32
    return %c0_i32, %c0_i32_0 : i32, i32
  }
  func.func @transform_9(%arg0: i32) -> (i32, i32) {
    %c0_i32 = arith.constant 0 : i32
    %c0_i32_0 = arith.constant 0 : i32
    return %arg0, %c0_i32 : i32, i32
  }
}

</mosaic_0001>

<bundles_post_ra>
// kernel: tpu_custom_call.1
= control target key start
LH: loop header
LB: loop body
LE: loop exit
PB: predicated region body
PF: predicated region fallthrough
CT: control target
= control target key end

     0   :  { %14 = vsyncpa [#allocation3], 0  ;;  %s1113_s0 = inlined_call_operand.hbm [shape: bf16[16,32], index: 0, kind: input, shape index: {}]   ;;  %s1114_s1 = inlined_call_operand.hbm [shape: bf16[32,128], index: 1, kind: input, shape index: {}]   ;;  %s1115_s2 = inlined_call_operand.vmem [shape: f32[1,128], index: 2, kind: input, shape index: {}]   ;;  %s1116_s3 = inlined_call_operand.hbm [shape: bf16[128,128], index: 3, kind: input, shape index: {}]   ;;  %s1117_s4 = inlined_call_operand.vmem [shape: f32[1,128], index: 4, kind: input, shape index: {}]   ;;  %s1118_s5 = inlined_call_operand.hbm [shape: bf16[128,256], index: 5, kind: input, shape index: {}]   ;;  %s1119_s6 = inlined_call_operand.vmem [shape: f32[1,256], index: 6, kind: input, shape index: {}]   ;;  %s1120_s7 = inlined_call_operand.hbm [shape: bf16[256,128], index: 7, kind: input, shape index: {}]   ;;  %s1121_s8 = inlined_call_operand.vmem [shape: f32[1,128], index: 8, kind: input, shape index: {}]   ;;  %s1122_s9 = inlined_call_operand.vmem [shape: f32[16,1], index: 9, kind: output, shape index: {}]  }
   0x1   :  { %15 = vsyncpa [#allocation5], 0 }
   0x2   :  { %16 = vsyncpa [#allocation8], 0  ;;  %s947_s30 = smov [#allocation4]   ;;  %s948_s11 = smov [#allocation7]  }
   0x3   :  { %s34_s10 = sshll.u32 %s947_s30, 4  ;;  %s62_s12 = sshll.u32 %s948_s11, 4  ;;  %s35_s10 = int_to_ptr.vmem [resolvable:$true] %s34_s10  ;;  %s1009_s12 = int_to_ptr.vmem [resolvable:$true] %s62_s12 }
   0x4   :  { %s831_s15 = scalar_lea.hbm %s1114_s1, 256 }
   0x5   :  { %p832_p0 = scmp.ne.s32.totalorder %s1114_s1, %s831_s15  ;;  %p835_p1 = scmp.lt.u32.totalorder %s831_s15, %s1114_s1 }
   0x7   :  { %p837_p2 = pnand %p835_p1, %p832_p0 }
   0x9   :  { %840 = shalt.err (!%p837_p2)
}
   0xa   :  { %s841_s20 = scalar_lea.vmem %s35_s10, 256  ;;  %p846_p4 = scmp.lt.s32.totalorder %s35_s10, %s35_s10 }
   0xb   :  { %p842_p3 = scmp.ne.s32.totalorder %s35_s10, %s841_s20  ;;  %p847_p5 = scmp.lt.s32.totalorder %s841_s20, %s841_s20 }
   0xd   :  { %p848_p6 = por %p847_p5, %p846_p4 }
   0xf   :  { %p849_p7 = pnand %p848_p6, %p842_p3 }
  0x11   :  { %852 = shalt.err (!%p849_p7)
}
  0x12   :  { %s949_s21 = smov 64   ;;  %s950_s22 = smov 4  }
  0x13   :  { %40 = dma.hbm_to_vmem [thread:$0]  %s1114_s1, 256, %s35_s10, [#allocation5], %s949_s21, %s949_s21, %s950_s22  }
  0x14   :  { %s853_s27 = scalar_lea.hbm %s1118_s5, 2048 }
  0x15   :  { %p854_p8 = scmp.ne.s32.totalorder %s1118_s5, %s853_s27  ;;  %p857_p9 = scmp.lt.u32.totalorder %s853_s27, %s1118_s5 }
  0x17   :  { %p859_p10 = pnand %p857_p9, %p854_p8 }
  0x19   :  { %862 = shalt.err (!%p859_p10)
}
  0x1a   :  { %s863_s13 = scalar_lea.vmem %s1009_s12, 2048  ;;  %p868_p12 = scmp.lt.s32.totalorder %s1009_s12, %s1009_s12 }
  0x1b   :  { %p864_p11 = scmp.ne.s32.totalorder %s1009_s12, %s863_s13  ;;  %p869_p13 = scmp.lt.s32.totalorder %s863_s13, %s863_s13 }
  0x1d   :  { %p870_p0 = por %p869_p13, %p868_p12 }
  0x1f   :  { %p871_p1 = pnand %p870_p0, %p864_p11 }
  0x21   :  { %874 = shalt.err (!%p871_p1)
}
  0x22   :  { %s951_s1 = smov 128   ;;  %s952_s10 = smov 8  }
  0x23   :  { %68 = dma.hbm_to_vmem [thread:$0]  %s1118_s5, 2048, %s1009_s12, [#allocation8], %s951_s1, %s951_s1, %s952_s10  }
  0x24   :  { %s953_s16 = smov [#allocation2]   ;;  %s954_s18 = smov [#allocation6]  }
  0x25   :  { %s22_s17 = sshll.u32 %s953_s16, 4  ;;  %s48_s19 = sshll.u32 %s954_s18, 4  ;;  %s23_s17 = int_to_ptr.vmem [resolvable:$true] %s22_s17  ;;  %s1043_s19 = int_to_ptr.vmem [resolvable:$true] %s48_s19 }
  0x26   :  { %s875_s24 = scalar_lea.hbm %s1113_s0, 128 }
  0x27   :  { %p876_p2 = scmp.ne.s32.totalorder %s1113_s0, %s875_s24  ;;  %p879_p3 = scmp.lt.u32.totalorder %s875_s24, %s1113_s0 }
  0x29   :  { %p881_p4 = pnand %p879_p3, %p876_p2 }
  0x2b   :  { %884 = shalt.err (!%p881_p4)
}
  0x2c   :  { %s885_s5 = scalar_lea.vmem %s23_s17, 128  ;;  %p890_p6 = scmp.lt.s32.totalorder %s23_s17, %s23_s17 }
  0x2d   :  { %p886_p5 = scmp.ne.s32.totalorder %s23_s17, %s885_s5  ;;  %p891_p7 = scmp.lt.s32.totalorder %s885_s5, %s885_s5 }
  0x2f   :  { %p892_p8 = por %p891_p7, %p890_p6 }
  0x31   :  { %p893_p9 = pnand %p892_p8, %p886_p5 }
  0x33   :  { %896 = shalt.err (!%p893_p9)
}
  0x34   :  { %28 = dma.hbm_to_vmem [thread:$0]  %s1113_s0, 128, %s23_s17, [#allocation3], %s949_s21, %s949_s21, %s950_s22  }
  0x35   :  { %s897_s13 = scalar_lea.hbm %s1116_s3, 1024 }
  0x36   :  { %p898_p10 = scmp.ne.s32.totalorder %s1116_s3, %s897_s13  ;;  %p901_p11 = scmp.lt.u32.totalorder %s897_s13, %s1116_s3 }
  0x38   :  { %p903_p12 = pnand %p901_p11, %p898_p10 }
  0x3a   :  { %906 = shalt.err (!%p903_p12)
}
  0x3b   :  { %s907_s16 = scalar_lea.vmem %s1043_s19, 1024  ;;  %p912_p0 = scmp.lt.s32.totalorder %s1043_s19, %s1043_s19 }
  0x3c   :  { %p908_p13 = scmp.ne.s32.totalorder %s1043_s19, %s907_s16  ;;  %p913_p1 = scmp.lt.s32.totalorder %s907_s16, %s907_s16 }
  0x3e   :  { %p914_p2 = por %p913_p1, %p912_p0 }
  0x40   :  { %p915_p3 = pnand %p914_p2, %p908_p13 }
  0x42   :  { %918 = shalt.err (!%p915_p3)
}
  0x43   :  { %54 = dma.hbm_to_vmem [thread:$0]  %s1116_s3, 1024, %s1043_s19, [#allocation5], %s949_s21, %s949_s21, %s950_s22  }
  0x44   :  { %s955_s18 = smov [#allocation9]   ;;  %s919_s25 = scalar_lea.hbm %s1120_s7, 2048 }
  0x45   :  { %s76_s20 = sshll.u32 %s955_s18, 4  ;;  %p920_p4 = scmp.ne.s32.totalorder %s1120_s7, %s919_s25  ;;  %s77_s20 = int_to_ptr.vmem [resolvable:$true] %s76_s20 }
  0x46   :  { %p923_p5 = scmp.lt.u32.totalorder %s919_s25, %s1120_s7 }
  0x48   :  { %p925_p6 = pnand %p923_p5, %p920_p4 }
  0x4a   :  { %928 = shalt.err (!%p925_p6)
}
  0x4b   :  { %s929_s12 = scalar_lea.vmem %s77_s20, 2048  ;;  %p934_p8 = scmp.lt.s32.totalorder %s77_s20, %s77_s20 }
  0x4c   :  { %p930_p7 = scmp.ne.s32.totalorder %s77_s20, %s929_s12  ;;  %p935_p9 = scmp.lt.s32.totalorder %s929_s12, %s929_s12 }
  0x4e   :  { %p936_p10 = por %p935_p9, %p934_p8 }
  0x50   :  { %p937_p11 = pnand %p936_p10, %p930_p7 }
  0x52   :  { %940 = shalt.err (!%p937_p11)
}
  0x53   :  { %82 = dma.hbm_to_vmem [thread:$0]  %s1120_s7, 2048, %s77_s20, [#allocation8], %s949_s21, %s949_s21, %s950_s22  }
  0x54   :  { %941 = dma.done.wait [#allocation3], 128  }
  0x55   :  { %942 = vsyncadd [#allocation3], 4294967168 }
  0x56   :  { %943 = dma.done.wait [#allocation5], 1280  }
  0x57   :  { %944 = vsyncadd [#allocation5], 4294966016 }
  0x58   :  { %945 = dma.done.wait [#allocation8], 4096  }
  0x59   :  { %946 = vsyncadd [#allocation8], 4294963200  ;;  %v956_v0 = vmov 0.0   ;;  %vm957_vm0 = vmmov 0   ;;  %v772_v1 = vld [vmem:[#allocation4] sm:$0xff]   ;;  %v773_v2 = vld [vmem:[#allocation4 + $0x8] sm:$0xff]  }
  0x5a   :  { %732 = vmatprep.subr.bf16.mxu0 %v956_v0  ;;  %736 = vmatprep.mubr.msk.bf16.mxu0 %vm957_vm0, %v956_v0  ;;  %v775_v3 = vld [vmem:[#allocation6] sm:$0xff]   ;;  %v774_v4 = vld [vmem:[#allocation2] sm:$0xff]   ;;  %vm131_vm1 = vcmask 261120   ;;  %v777_v6 = vld [vmem:[#allocation6 + $0x10] sm:$0xff]   ;;  %v958_v38 = vmov 0   ;;  %vm639_vm2 = vcmask 7168  }
  0x5b   :  { %740 = vmatprep.subr.bf16.mxu1 %v956_v0  ;;  %756 = vmatprep.mubr.msk.bf16.mxu1 %vm957_vm0, %v956_v0  ;;  %v776_v5 = vld [vmem:[#allocation6 + $0x8] sm:$0xff]   ;;  %v778_v7 = vld [vmem:[#allocation6 + $0x18] sm:$0xff]   ;;  %v779_v8 = vld [vmem:[#allocation6 + $0x20] sm:$0xff]  }
  0x5c   :  { %733 = vmatpush3.bf16.msra.mxu0 %v772_v1  ;;  %741 = vmatpush3.bf16.msra.mxu1 %v775_v3  ;;  %v780_v9 = vld [vmem:[#allocation6 + $0x28] sm:$0xff]   ;;  %v781_v10 = vld [vmem:[#allocation6 + $0x30] sm:$0xff]   ;;  %v782_v11 = vld [vmem:[#allocation6 + $0x38] sm:$0xff]   ;;  %v312_v1 = vlaneseq }
  0x5d   :  { %734 = vmatprep.subr.bf16.mxu0 %v956_v0  ;;  %742 = vmatprep.subr.bf16.mxu1 %v956_v0  ;;  %v783_v12 = vld [vmem:[#allocation7] ss:$8 sps:$4 sm:$0xff]   ;;  %v785_v13 = vld [vmem:[#allocation7 + $0x4] ss:$8 sps:$4 sm:$0xff]   ;;  %v788_v14 = vld [vmem:[#allocation7 + $0x14] ss:$8 sps:$4 sm:$0xff]  }
  0x5e   :  { %v786_v15 = vld [vmem:[#allocation7 + $0x10] ss:$8 sps:$4 sm:$0xff]   ;;  %v791_v16 = vld [vmem:[#allocation7 + $0x24] ss:$8 sps:$4 sm:$0xff]   ;;  %v789_v17 = vld [vmem:[#allocation7 + $0x20] ss:$8 sps:$4 sm:$0xff]  }
  0x5f   :  { %v794_v18 = vld [vmem:[#allocation7 + $0x34] ss:$8 sps:$4 sm:$0xff]   ;;  %v792_v19 = vld [vmem:[#allocation7 + $0x30] ss:$8 sps:$4 sm:$0xff]   ;;  %v797_v20 = vld [vmem:[#allocation7 + $0x44] ss:$8 sps:$4 sm:$0xff]  }
  0x60   :  { %735 = vmatpush3.bf16.msra.mxu0 %v773_v2  ;;  %743 = vmatpush3.bf16.msra.mxu1 %v776_v5  ;;  %v795_v21 = vld [vmem:[#allocation7 + $0x40] ss:$8 sps:$4 sm:$0xff]   ;;  %v800_v22 = vld [vmem:[#allocation7 + $0x54] ss:$8 sps:$4 sm:$0xff]   ;;  %v798_v23 = vld [vmem:[#allocation7 + $0x50] ss:$8 sps:$4 sm:$0xff]  }
  0x61   :  { %744 = vmatprep.subr.bf16.mxu1 %v956_v0  ;;  %402 = vmatprep.subr.bf16.mxu0 %v785_v13  ;;  %v649_v24 = vld [vmem:[%s1115_s2] ss:$0 sm:$0xff]  ;;  %v803_v34 = vld [vmem:[#allocation7 + $0x64] ss:$8 sps:$4 sm:$0xff]   ;;  %v801_v35 = vld [vmem:[#allocation7 + $0x60] ss:$8 sps:$4 sm:$0xff]  }
  0x62   :  { %v806_v36 = vld [vmem:[#allocation7 + $0x74] ss:$8 sps:$4 sm:$0xff]   ;;  %v804_v37 = vld [vmem:[#allocation7 + $0x70] ss:$8 sps:$4 sm:$0xff]   ;;  %v807_v39 = vld [vmem:[#allocation9 + $0x40] sm:$0xff]   ;;  %v313_v2 = vshrl.u32 %v312_v1, 7 }
  0x63   :  { %737 = vmatmul.mubr.msk.bf16.vlgmr.msra.gmra.mrb[0].mxu0 %vm131_vm1, %v774_v4  ;;  %v808_v40 = vld [vmem:[#allocation9] sm:$0xff]   ;;  %v809_v41 = vld [vmem:[#allocation9 + $0x48] sm:$0xff]   ;;  %v811_v43 = vld [vmem:[#allocation9 + $0x50] sm:$0xff]  }
  0x64   :  { %745 = vmatpush3.bf16.msra.mxu1 %v777_v6  ;;  %403 = vmatpush1.bf16.msra.mxu0 %v783_v12  ;;  %v810_v42 = vld [vmem:[#allocation9 + $0x8] sm:$0xff]   ;;  %v812_v44 = vld [vmem:[#allocation9 + $0x10] sm:$0xff]   ;;  %v813_v45 = vld [vmem:[#allocation9 + $0x58] sm:$0xff]   ;;  %v314_v3 = vsub.s32 0, %v313_v2  ;;  %v318_v5 = vsub.s32 1, %v313_v2 }
  0x65   :  { %746 = vmatprep.subr.bf16.mxu1 %v956_v0  ;;  %404 = vmatprep.subr.bf16.mxu0 %v788_v14  ;;  %v814_v46 = vld [vmem:[#allocation9 + $0x18] sm:$0xff]   ;;  %v815_v47 = vld [vmem:[#allocation9 + $0x60] sm:$0xff]   ;;  %v817_v49 = vld [vmem:[#allocation9 + $0x68] sm:$0xff]  }
  0x66   :  { %434 = vmatprep.mubr.bf16.mxu0 %v958_v38  ;;  %v816_v48 = vld [vmem:[#allocation9 + $0x20] sm:$0xff]   ;;  %v654_v50 = vld [vmem:[%s1117_s4] ss:$0 sm:$0xff]  ;;  %v818_v60 = vld [vmem:[#allocation9 + $0x28] sm:$0xff]  }
  0x67   :  { %v819_v61 = vld [vmem:[#allocation9 + $0x70] sm:$0xff]   ;;  %v821_v63 = vld [vmem:[#allocation9 + $0x78] sm:$0xff]  }
  0x68   :  { %747 = vmatpush3.bf16.msra.mxu1 %v778_v7  ;;  %405 = vmatpush1.bf16.msra.mxu0 %v786_v15  ;;  %v820_v62 = vld [vmem:[#allocation9 + $0x30] sm:$0xff]   ;;  %v310_v4 = vld [vmem:[%s1119_s6] sm:$0x3] }
  0x69   :  { %748 = vmatprep.subr.bf16.mxu1 %v956_v0  ;;  %406 = vmatprep.subr.bf16.mxu0 %v791_v16  ;;  %v315_v6 = vrot.slane %v310_v4, %v314_v3  ;;  %v319_v7 = vrot.slane %v310_v4, %v318_v5 }
  0x6c   :  { %749 = vmatpush3.bf16.msra.mxu1 %v779_v8  ;;  %407 = vmatpush1.bf16.msra.mxu0 %v789_v17 }
  0x6d   :  { %750 = vmatprep.subr.bf16.mxu1 %v956_v0  ;;  %408 = vmatprep.subr.bf16.mxu0 %v794_v18 }
  0x70   :  { %751 = vmatpush3.bf16.msra.mxu1 %v780_v9  ;;  %409 = vmatpush1.bf16.msra.mxu0 %v792_v19 }
  0x71   :  { %752 = vmatprep.subr.bf16.mxu1 %v956_v0  ;;  %410 = vmatprep.subr.bf16.mxu0 %v797_v20 }
  0x74   :  { %753 = vmatpush3.bf16.msra.mxu1 %v781_v10  ;;  %411 = vmatpush1.bf16.msra.mxu0 %v795_v21 }
  0x75   :  { %754 = vmatprep.subr.bf16.mxu1 %v956_v0  ;;  %412 = vmatprep.subr.bf16.mxu0 %v800_v22  ;;  %v822_v0 = vld [vmem:[#allocation9 + $0x38] sm:$0xff]  }
  0x78   :  { %755 = vmatpush3.bf16.msra.mxu1 %v782_v11  ;;  %413 = vmatpush1.bf16.msra.mxu0 %v798_v23  ;;  %v679_v23 = vld [vmem:[%s1121_s8] ss:$0 sm:$0xff] }
  0x79   :  { %414 = vmatprep.subr.bf16.mxu0 %v803_v34  ;;  %710 = vmatprep.subr.bf16.mxu1 %v807_v39 }
  0x7c   :  { %415 = vmatpush1.bf16.msra.mxu0 %v801_v35 }
  0x7d   :  { %416 = vmatprep.subr.bf16.mxu0 %v806_v36 }
  0x80   :  { %417 = vmatpush1.bf16.msra.mxu0 %v804_v37 }
 0x136   :  { %v169_v25 = vpop.f32.mrb[0].mxu0 }
 0x137   :  { %v170_v26 = vadd.f32 %v649_v24, %v169_v25  ;;  %v738_v27 = vpop.f32.mrb[1].mxu0 }
 0x138   :  { %v172_v28 = vpop.f32.mrb[2].mxu0 }
 0x139   :  { %v173_v29 = vadd.f32 %v649_v24, %v172_v28  ;;  %v739_v30 = vpop.f32.mrb[3].mxu0  ;;  %v176_v31 = vmax.f32 %v170_v26, 0.0 }
 0x13b   :  { %v177_v32 = vmax.f32 %v173_v29, 0.0 }
 0x13d   :  { %v178_v33 = vpack.c.bf16 %v177_v32, %v176_v31 }
 0x13f   :  { %757 = vmatmul.mubr.bf16.vlgmr.msra.gmra.mrb[0].mxu1 %v178_v33 }
 0x140   :  { %711 = vmatpush3.bf16.msra.mxu1 %v808_v40 }
 0x141   :  { %712 = vmatprep.subr.bf16.mxu1 %v809_v41 }
 0x144   :  { %713 = vmatpush3.bf16.msra.mxu1 %v810_v42 }
 0x145   :  { %714 = vmatprep.subr.bf16.mxu1 %v811_v43 }
 0x148   :  { %715 = vmatpush3.bf16.msra.mxu1 %v812_v44 }
 0x149   :  { %716 = vmatprep.subr.bf16.mxu1 %v813_v45 }
 0x14c   :  { %717 = vmatpush3.bf16.msra.mxu1 %v814_v46 }
 0x14d   :  { %718 = vmatprep.subr.bf16.mxu1 %v815_v47 }
 0x150   :  { %719 = vmatpush3.bf16.msra.mxu1 %v816_v48 }
 0x151   :  { %720 = vmatprep.subr.bf16.mxu1 %v817_v49 }
 0x154   :  { %721 = vmatpush3.bf16.msra.mxu1 %v818_v60 }
 0x155   :  { %722 = vmatprep.subr.bf16.mxu1 %v819_v61 }
 0x158   :  { %723 = vmatpush3.bf16.msra.mxu1 %v820_v62 }
 0x159   :  { %724 = vmatprep.subr.bf16.mxu1 %v821_v63 }
 0x15c   :  { %725 = vmatpush3.bf16.msra.mxu1 %v822_v0 }
 0x212   :  { %v284_v51 = vpop.f32.mrb[0].mxu1 }
 0x213   :  { %v285_v52 = vadd.f32 %v654_v50, %v284_v51  ;;  %v758_v53 = vpop.f32.mrb[1].mxu1 }
 0x214   :  { %v287_v54 = vpop.f32.mrb[2].mxu1 }
 0x215   :  { %v288_v55 = vadd.f32 %v654_v50, %v287_v54  ;;  %v759_v56 = vpop.f32.mrb[3].mxu1  ;;  %v291_v57 = vmax.f32 %v285_v52, 0.0 }
 0x217   :  { %v292_v58 = vmax.f32 %v288_v55, 0.0 }
 0x219   :  { %v293_v59 = vpack.c.bf16 %v292_v58, %v291_v57 }
 0x21b   :  { %435 = vmatmul.mubr.bf16.vlgmr.msra.gmra.mrb[4].mxu0 %v293_v59 }
 0x2ee   :  { %v436_v8 = vpop.f32.mrb[4].mxu0 }
 0x2ef   :  { %v437_v9 = vadd.f32 %v436_v8, %v315_v6  ;;  %v438_v10 = vpop.f32.mrb[5].mxu0 }
 0x2f0   :  { %v439_v11 = vadd.f32 %v438_v10, %v319_v7  ;;  %v440_v12 = vpop.f32.mrb[6].mxu0 }
 0x2f1   :  { %v441_v13 = vadd.f32 %v440_v12, %v315_v6  ;;  %v442_v14 = vpop.f32.mrb[7].mxu0  ;;  %v445_v16 = vmax.f32 %v437_v9, 0.0 }
 0x2f2   :  { %v443_v15 = vadd.f32 %v442_v14, %v319_v7  ;;  %v446_v18 = vmax.f32 %v439_v11, 0.0 }
 0x2f3   :  { %v447_v17 = vmax.f32 %v441_v13, 0.0 }
 0x2f4   :  { %v448_v19 = vmax.f32 %v443_v15, 0.0 }
 0x2f5   :  { %v449_v20 = vpack.c.bf16 %v447_v17, %v445_v16 }
 0x2f6   :  { %v450_v21 = vpack.c.bf16 %v448_v19, %v446_v18 }
 0x2f8   :  { %618 = vmatprep.mubr.bf16.mxu1 %v450_v21 }
 0x2f9   :  { %619 = vmatmul.mubr.bf16.vlgmr.msra.gmra.mrb[4].mxu1 %v449_v20 }
 0x3cc   :  { %v726_v22 = vpop.f32.mrb[4].mxu1 }
 0x3cd   :  { %v727_v24 = vpop.f32.mrb[5].mxu1 }
 0x3ce   :  { %v728_v25 = vadd.f32 %v727_v24, %v726_v22  ;;  %v729_v26 = vpop.f32.mrb[6].mxu1 }
 0x3cf   :  { %v730_v27 = vpop.f32.mrb[7].mxu1 }
 0x3d0   :  { %v621_v28 = vadd.f32 %v728_v25, %v679_v23  ;;  %v731_v29 = vadd.f32 %v730_v27, %v729_v26 }
 0x3d2   :  { %v696_v30 = vmul.f32 -1.442695, %v621_v28  ;;  %v624_v31 = vadd.f32 %v731_v29, %v679_v23 }
 0x3d4   :  { %823 = vpow2.f32 %v696_v30  ;;  %v697_v32 = vmul.f32 -1.442695, %v624_v31 }
 0x3d6   :  { %825 = vpow2.f32 %v697_v32 }
 0x3de   :  { %v824_v33 = vpop.eup %823 }
 0x3df   :  { %v633_v34 = vadd.f32 1.0, %v824_v33 }
 0x3e0   :  { %v826_v35 = vpop.eup %825 }
 0x3e1   :  { %827 = vrcp.f32 %v633_v34  ;;  %v634_v36 = vadd.f32 1.0, %v826_v35 }
 0x3e3   :  { %829 = vrcp.f32 %v634_v36 }
 0x3eb   :  { %v828_v37 = vpop.eup %827 }
 0x3ec   :  { %640 = vst.msk [vmem:[%s1122_s9] sm:$0xff] %vm639_vm2, %v828_v37 }
 0x3ed   :  { %v830_v38 = vpop.eup %829 }
 0x3ee   :  { %641 = vst.msk [vmem:[%s1122_s9 + $0x8] sm:$0xff] %vm639_vm2, %v830_v38 }
 0x3ef   :  { %646 = vsyncpa [#allocation3], 1 }
 0x3f0   :  { %647 = vsyncpa [#allocation5], 1 }
 0x3f1   :  { %648 = vsyncpa [#allocation8], 1 }

</bundles_post_ra>
